<compile_context>
chip_gen: v7x
topology: tpu7x:2x2x1
jax: 0.10.0
libtpu: 0.0.40
codegen_flags: <defaults>
</compile_context>

<pallas_src>
import jax
import jax.numpy as jnp
from jax.experimental import pallas as pl
from jax.experimental.pallas import tpu as pltpu


def _round_up(n, m):
    return ((n + m - 1) // m) * m


# ----------------------------------------------------------------------------
# Fused whole-MLP kernel (built per static config)
# ----------------------------------------------------------------------------
def _make_fused_mlp_kernel(real_out_widths, layer_norm, crelu):
    """real_out_widths: tuple of UNPADDED output widths per Linear layer."""
    n_layers = len(real_out_widths)

    def kernel(*refs):
        # refs = [x, <per-layer params...>, out]
        o_ref = refs[-1]
        idx = 0
        x_ref = refs[idx]; idx += 1

        h_pos = x_ref[...]          # "positive" activation stream
        h_neg = None                # "negative" stream (only when crelu)

        for li in range(n_layers):
            is_final = (li == n_layers - 1)

            w_ref = refs[idx]; idx += 1
            w_neg_ref = None
            if crelu and li > 0:
                w_neg_ref = refs[idx]; idx += 1
            b_ref = refs[idx]; idx += 1

            # Linear: x @ W + b.  CReLU inputs use the split-weight form,
            # avoiding any lane-axis concatenate.
            z = jnp.dot(h_pos, w_ref[...], preferred_element_type=jnp.float32)
            if w_neg_ref is not None:
                z = z + jnp.dot(h_neg, w_neg_ref[...],
                                preferred_element_type=jnp.float32)
            z = z + b_ref[...]

            if is_final:
                # Last nn.Linear: no norm, no activation.  Padded lanes of z
                # are exactly zero -> lane-dense (unmasked) store.
                o_ref[...] = z.astype(o_ref.dtype)
                return

            if layer_norm:
                g_ref = refs[idx]; idx += 1
                beta_ref = refs[idx]; idx += 1
                inv_n = 1.0 / float(real_out_widths[li])
                # Padded lanes of z are exactly 0, so sums over the padded
                # width equal sums over the real features -> no lane mask.
                mean = jnp.sum(z, axis=-1, keepdims=True) * inv_n
                mean_sq = jnp.sum(z * z, axis=-1, keepdims=True) * inv_n
                var = mean_sq - mean * mean
                # gamma/beta padded lanes are zero -> padded lanes stay 0.
                z = ((z - mean) * jax.lax.rsqrt(var + 1e-5) * g_ref[...]
                     + beta_ref[...])

            # activation_fn = nn.ReLU
            h_pos = jnp.maximum(z, 0.0)
            h_neg = jnp.maximum(-z, 0.0) if crelu else None

    return kernel


# ----------------------------------------------------------------------------
# Parameter init (deterministic, PyTorch-Linear-style uniform bounds)
# ----------------------------------------------------------------------------
def init_mlp_params(key, input_size, output_size, shape, *, crelu):
    params = []
    dims = list(shape) + [output_size]
    in_dim = input_size
    for i, out_dim in enumerate(dims):
        final = (i == len(dims) - 1)
        key, kw, kb = jax.random.split(key, 3)
        bound = 1.0 / float(in_dim) ** 0.5
        w = jax.random.uniform(kw, (in_dim, out_dim), jnp.float32, -bound, bound)
        b = jax.random.uniform(kb, (1, out_dim), jnp.float32, -bound, bound)
        gamma = jnp.ones((1, out_dim), jnp.float32)   # LayerNorm weight
        beta = jnp.zeros((1, out_dim), jnp.float32)   # LayerNorm bias
        params.append((w, b, gamma, beta))
        in_dim = out_dim * (2 if (crelu and not final) else 1)
    return params


# ----------------------------------------------------------------------------
# One-time packing: pad/split params into the flat, lane-dense list the fused
# kernel consumes.  gamma/beta are NOT included for the final layer.
# ----------------------------------------------------------------------------
def pack_mlp_params(params, input_size, *, layer_norm, crelu):
    n_layers = len(params)
    real_out_widths = [w.shape[1] for (w, _, _, _) in params]
    pad_out_widths = [_round_up(d, 128) for d in real_out_widths]

    flat = []
    prev_real = input_size   # real width of each activation stream
    prev_pad = input_size    # padded width actually fed forward
    for li, (w, b, g, beta) in enumerate(params):
        is_final = (li == n_layers - 1)
        out_real = real_out_widths[li]
        out_pad = pad_out_widths[li]
        if crelu and li > 0:
            # This Linear consumes cat(relu(h), relu(-h)); split the weight so
            # the kernel does two matmuls instead of a lane-axis concat.
            w_top = jnp.pad(w[:prev_real, :],
                            ((0, prev_pad - prev_real), (0, out_pad - out_real)))
            w_bot = jnp.pad(w[prev_real:, :],
                            ((0, prev_pad - prev_real), (0, out_pad - out_real)))
            flat += [w_top, w_bot]
        else:
            flat.append(jnp.pad(w, ((0, prev_pad - w.shape[0]),
                                    (0, out_pad - out_real))))
        flat.append(jnp.pad(b, ((0, 0), (0, out_pad - out_real))))
        if layer_norm and not is_final:
            flat.append(jnp.pad(g, ((0, 0), (0, out_pad - out_real))))
            flat.append(jnp.pad(beta, ((0, 0), (0, out_pad - out_real))))
        prev_real = out_real
        prev_pad = out_pad

    meta = dict(input_size=input_size,
                real_out_widths=tuple(real_out_widths),
                pad_out_widths=tuple(pad_out_widths),
                layer_norm=layer_norm, crelu=crelu)
    return flat, meta


# ----------------------------------------------------------------------------
# Single fused pallas_call over a batch grid
# ----------------------------------------------------------------------------
def mlp_forward_pallas(x, flat_params, meta, *, batch_tile=512):
    batch, in_dim = x.shape
    assert in_dim == meta["input_size"]

    # Sublane-aligned batch tile; weights stay VMEM-resident across grid steps.
    tb = batch_tile if batch >= batch_tile else _round_up(max(batch, 1), 8)
    batch_pad = _round_up(batch, tb)
    if batch_pad != batch:
        x = jnp.pad(x, ((0, batch_pad - batch), (0, 0)))

    in_specs = [pl.BlockSpec((tb, in_dim), lambda i: (i, 0))]
    for arr in flat_params:
        in_specs.append(pl.BlockSpec(arr.shape, lambda i: (0, 0)))

    out_pad = meta["pad_out_widths"][-1]
    kernel = _make_fused_mlp_kernel(meta["real_out_widths"],
                                    meta["layer_norm"], meta["crelu"])

    out = pl.pallas_call(
        kernel,
        grid=(batch_pad // tb,),
        out_shape=jax.ShapeDtypeStruct((batch_pad, out_pad), jnp.float32),
        in_specs=in_specs,
        out_specs=pl.BlockSpec((tb, out_pad), lambda i: (i, 0)),
        compiler_params=pltpu.CompilerParams(
            dimension_semantics=("parallel",)),
    )(x, *flat_params)

    # Strip batch/lane padding.
    return out[:batch, :meta["real_out_widths"][-1]]


# ----------------------------------------------------------------------------
# Pure-JAX reference (mirrors the PyTorch forward exactly) for verification.
# ----------------------------------------------------------------------------
def mlp_forward_ref(x, params, *, layer_norm, crelu):
    n = len(params)
    for i, (w, b, g, beta) in enumerate(params):
        final = (i == n - 1)
        h = x @ w + b
        if final:
            return h
        if layer_norm:
            mean = jnp.mean(h, axis=-1, keepdims=True)
            var = jnp.mean((h - mean) ** 2, axis=-1, keepdims=True)
            h = (h - mean) / jnp.sqrt(var + 1e-5) * g + beta
        if crelu:
            x = jnp.concatenate([jnp.maximum(h, 0.0), jnp.maximum(-h, 0.0)],
                                axis=-1)
        else:
            x = jnp.maximum(h, 0.0)
    return x


if __name__ == "__main__":
    # Small, deterministic config matching the module's demonstrated use.
    input_size, output_size = 32, 8
    hidden_shape = (64, 64)

    key = jax.random.PRNGKey(0)
    key, kx_small, kx_big = jax.random.split(key, 3)
    x_small = jax.random.normal(kx_small, (2, input_size), jnp.float32)
    # Also exercise batch padding + a multi-step grid (grid > 1).
    x_big = jax.random.normal(kx_big, (300, input_size), jnp.float32)

    # Primary config (layer_norm=True, crelu=False) plus the other module
    # paths, all checked against the pure-JAX reference.
    for layer_norm, crelu in [(True, False), (False, False), (True, True)]:
        params = init_mlp_params(key, input_size, output_size, hidden_shape,
                                 crelu=crelu)
        flat, meta = pack_mlp_params(params, input_size,
                                     layer_norm=layer_norm, crelu=crelu)

        # batch=2 (sub-tile) and batch=300 with a 128-row tile (grid of 3).
        for x, tile in ((x_small, 512), (x_big, 128)):
            out = mlp_forward_pallas(x, flat, meta, batch_tile=tile)
            out = jax.block_until_ready(out)
            ref = mlp_forward_ref(x, params, layer_norm=layer_norm, crelu=crelu)
            assert out.shape == (x.shape[0], output_size), out.shape
            assert jnp.allclose(out, ref, atol=1e-4, rtol=1e-4), (
                f"mismatch vs reference (layer_norm={layer_norm}, "
                f"crelu={crelu}, batch={x.shape[0]})")

    print("KERNEL_OK")
</pallas_src>

<mosaic_0001>
module attributes {stable_mosaic.version = 11 : i64} {
  func.func @kernel(%arg0: i32, %arg1: memref<8x32xf32, #tpu.memory_space<vmem>>, %arg2: memref<32x128xf32, #tpu.memory_space<vmem>>, %arg3: memref<1x128xf32, #tpu.memory_space<vmem>>, %arg4: memref<1x128xf32, #tpu.memory_space<vmem>>, %arg5: memref<1x128xf32, #tpu.memory_space<vmem>>, %arg6: memref<128x128xf32, #tpu.memory_space<vmem>>, %arg7: memref<1x128xf32, #tpu.memory_space<vmem>>, %arg8: memref<1x128xf32, #tpu.memory_space<vmem>>, %arg9: memref<1x128xf32, #tpu.memory_space<vmem>>, %arg10: memref<128x128xf32, #tpu.memory_space<vmem>>, %arg11: memref<1x128xf32, #tpu.memory_space<vmem>>, %arg12: memref<8x128xf32, #tpu.memory_space<vmem>>) attributes {dimension_semantics = [#tpu.dimension_semantics<parallel>], iteration_bounds = array<i64: 1>, scalar_prefetch = 0 : i64, scratch_operands = 0 : i64, tpu.core_type = #tpu.core_type<tc>, window_params = [{transform_indices = @transform_0, window_bounds = array<i64: 8, 32>}, {pipeline_mode = #tpu.pipeline_mode<synchronous>, transform_indices = @transform_1, window_bounds = array<i64: 32, 128>}, {pipeline_mode = #tpu.pipeline_mode<synchronous>, transform_indices = @transform_2, window_bounds = array<i64: 1, 128>}, {pipeline_mode = #tpu.pipeline_mode<synchronous>, transform_indices = @transform_3, window_bounds = array<i64: 1, 128>}, {pipeline_mode = #tpu.pipeline_mode<synchronous>, transform_indices = @transform_4, window_bounds = array<i64: 1, 128>}, {pipeline_mode = #tpu.pipeline_mode<synchronous>, transform_indices = @transform_5, window_bounds = array<i64: 128, 128>}, {pipeline_mode = #tpu.pipeline_mode<synchronous>, transform_indices = @transform_6, window_bounds = array<i64: 1, 128>}, {pipeline_mode = #tpu.pipeline_mode<synchronous>, transform_indices = @transform_7, window_bounds = array<i64: 1, 128>}, {pipeline_mode = #tpu.pipeline_mode<synchronous>, transform_indices = @transform_8, window_bounds = array<i64: 1, 128>}, {pipeline_mode = #tpu.pipeline_mode<synchronous>, transform_indices = @transform_9, window_bounds = array<i64: 128, 128>}, {pipeline_mode = #tpu.pipeline_mode<synchronous>, transform_indices = @transform_10, window_bounds = array<i64: 1, 128>}, {transform_indices = @transform_11, window_bounds = array<i64: 8, 128>}]} {
    %c0 = arith.constant 0 : index
    %c0_0 = arith.constant 0 : index
    %0 = vector.load %arg1[%c0, %c0_0] : memref<8x32xf32, #tpu.memory_space<vmem>>, vector<8x32xf32>
    %c0_1 = arith.constant 0 : index
    %c0_2 = arith.constant 0 : index
    %1 = vector.load %arg2[%c0_1, %c0_2] : memref<32x128xf32, #tpu.memory_space<vmem>>, vector<32x128xf32>
    %cst = arith.constant dense<0.000000e+00> : vector<8x128xf32>
    %2 = tpu.matmul %0, %1, %cst {dimension_numbers = #tpu.dot_dimension_numbers<[1], [0], [0], [1], [0, 0, 1, 1], [], []>} : vector<8x32xf32>, vector<32x128xf32>, vector<8x128xf32> -> vector<8x128xf32>
    %c0_3 = arith.constant 0 : index
    %c0_4 = arith.constant 0 : index
    %3 = vector.load %arg3[%c0_3, %c0_4] : memref<1x128xf32, #tpu.memory_space<vmem>>, vector<1x128xf32>
    %4 = vector.broadcast %3 : vector<1x128xf32> to vector<8x128xf32>
    %5 = arith.addf %2, %4 : vector<8x128xf32>
    %cst_5 = arith.constant dense<0.000000e+00> : vector<8xf32>
    %6 = vector.multi_reduction <add>, %5, %cst_5 [1] : vector<8x128xf32> to vector<8xf32>
    %7 = vector.shape_cast %6 : vector<8xf32> to vector<8x1xf32>
    %cst_6 = arith.constant 1.562500e-02 : f32
    %8 = vector.broadcast %cst_6 : f32 to vector<8x1xf32>
    %9 = arith.mulf %7, %8 : vector<8x1xf32>
    %10 = arith.mulf %5, %5 : vector<8x128xf32>
    %cst_7 = arith.constant dense<0.000000e+00> : vector<8xf32>
    %11 = vector.multi_reduction <add>, %10, %cst_7 [1] : vector<8x128xf32> to vector<8xf32>
    %12 = vector.shape_cast %11 : vector<8xf32> to vector<8x1xf32>
    %cst_8 = arith.constant 1.562500e-02 : f32
    %13 = vector.broadcast %cst_8 : f32 to vector<8x1xf32>
    %14 = arith.mulf %12, %13 : vector<8x1xf32>
    %15 = arith.mulf %9, %9 : vector<8x1xf32>
    %16 = arith.subf %14, %15 : vector<8x1xf32>
    %17 = vector.broadcast %9 : vector<8x1xf32> to vector<8x128xf32>
    %18 = arith.subf %5, %17 : vector<8x128xf32>
    %cst_9 = arith.constant 9.99999974E-6 : f32
    %19 = vector.broadcast %cst_9 : f32 to vector<8x1xf32>
    %20 = arith.addf %16, %19 : vector<8x1xf32>
    %21 = math.rsqrt %20 : vector<8x1xf32>
    %22 = vector.broadcast %21 : vector<8x1xf32> to vector<8x128xf32>
    %23 = arith.mulf %18, %22 : vector<8x128xf32>
    %c0_10 = arith.constant 0 : index
    %c0_11 = arith.constant 0 : index
    %24 = vector.load %arg4[%c0_10, %c0_11] : memref<1x128xf32, #tpu.memory_space<vmem>>, vector<1x128xf32>
    %25 = vector.broadcast %24 : vector<1x128xf32> to vector<8x128xf32>
    %26 = arith.mulf %23, %25 : vector<8x128xf32>
    %c0_12 = arith.constant 0 : index
    %c0_13 = arith.constant 0 : index
    %27 = vector.load %arg5[%c0_12, %c0_13] : memref<1x128xf32, #tpu.memory_space<vmem>>, vector<1x128xf32>
    %28 = vector.broadcast %27 : vector<1x128xf32> to vector<8x128xf32>
    %29 = arith.addf %26, %28 : vector<8x128xf32>
    %cst_14 = arith.constant 0.000000e+00 : f32
    %30 = vector.broadcast %cst_14 : f32 to vector<8x128xf32>
    %31 = arith.maximumf %29, %30 : vector<8x128xf32>
    %c0_15 = arith.constant 0 : index
    %c0_16 = arith.constant 0 : index
    %32 = vector.load %arg6[%c0_15, %c0_16] : memref<128x128xf32, #tpu.memory_space<vmem>>, vector<128x128xf32>
    %cst_17 = arith.constant dense<0.000000e+00> : vector<8x128xf32>
    %33 = tpu.matmul %31, %32, %cst_17 {dimension_numbers = #tpu.dot_dimension_numbers<[1], [0], [0], [1], [0, 0, 1, 1], [], []>} : vector<8x128xf32>, vector<128x128xf32>, vector<8x128xf32> -> vector<8x128xf32>
    %c0_18 = arith.constant 0 : index
    %c0_19 = arith.constant 0 : index
    %34 = vector.load %arg7[%c0_18, %c0_19] : memref<1x128xf32, #tpu.memory_space<vmem>>, vector<1x128xf32>
    %35 = vector.broadcast %34 : vector<1x128xf32> to vector<8x128xf32>
    %36 = arith.addf %33, %35 : vector<8x128xf32>
    %cst_20 = arith.constant dense<0.000000e+00> : vector<8xf32>
    %37 = vector.multi_reduction <add>, %36, %cst_20 [1] : vector<8x128xf32> to vector<8xf32>
    %38 = vector.shape_cast %37 : vector<8xf32> to vector<8x1xf32>
    %cst_21 = arith.constant 1.562500e-02 : f32
    %39 = vector.broadcast %cst_21 : f32 to vector<8x1xf32>
    %40 = arith.mulf %38, %39 : vector<8x1xf32>
    %41 = arith.mulf %36, %36 : vector<8x128xf32>
    %cst_22 = arith.constant dense<0.000000e+00> : vector<8xf32>
    %42 = vector.multi_reduction <add>, %41, %cst_22 [1] : vector<8x128xf32> to vector<8xf32>
    %43 = vector.shape_cast %42 : vector<8xf32> to vector<8x1xf32>
    %cst_23 = arith.constant 1.562500e-02 : f32
    %44 = vector.broadcast %cst_23 : f32 to vector<8x1xf32>
    %45 = arith.mulf %43, %44 : vector<8x1xf32>
    %46 = arith.mulf %40, %40 : vector<8x1xf32>
    %47 = arith.subf %45, %46 : vector<8x1xf32>
    %48 = vector.broadcast %40 : vector<8x1xf32> to vector<8x128xf32>
    %49 = arith.subf %36, %48 : vector<8x128xf32>
    %cst_24 = arith.constant 9.99999974E-6 : f32
    %50 = vector.broadcast %cst_24 : f32 to vector<8x1xf32>
    %51 = arith.addf %47, %50 : vector<8x1xf32>
    %52 = math.rsqrt %51 : vector<8x1xf32>
    %53 = vector.broadcast %52 : vector<8x1xf32> to vector<8x128xf32>
    %54 = arith.mulf %49, %53 : vector<8x128xf32>
    %c0_25 = arith.constant 0 : index
    %c0_26 = arith.constant 0 : index
    %55 = vector.load %arg8[%c0_25, %c0_26] : memref<1x128xf32, #tpu.memory_space<vmem>>, vector<1x128xf32>
    %56 = vector.broadcast %55 : vector<1x128xf32> to vector<8x128xf32>
    %57 = arith.mulf %54, %56 : vector<8x128xf32>
    %c0_27 = arith.constant 0 : index
    %c0_28 = arith.constant 0 : index
    %58 = vector.load %arg9[%c0_27, %c0_28] : memref<1x128xf32, #tpu.memory_space<vmem>>, vector<1x128xf32>
    %59 = vector.broadcast %58 : vector<1x128xf32> to vector<8x128xf32>
    %60 = arith.addf %57, %59 : vector<8x128xf32>
    %cst_29 = arith.constant 0.000000e+00 : f32
    %61 = vector.broadcast %cst_29 : f32 to vector<8x128xf32>
    %62 = arith.maximumf %60, %61 : vector<8x128xf32>
    %c0_30 = arith.constant 0 : index
    %c0_31 = arith.constant 0 : index
    %63 = vector.load %arg10[%c0_30, %c0_31] : memref<128x128xf32, #tpu.memory_space<vmem>>, vector<128x128xf32>
    %cst_32 = arith.constant dense<0.000000e+00> : vector<8x128xf32>
    %64 = tpu.matmul %62, %63, %cst_32 {dimension_numbers = #tpu.dot_dimension_numbers<[1], [0], [0], [1], [0, 0, 1, 1], [], []>} : vector<8x128xf32>, vector<128x128xf32>, vector<8x128xf32> -> vector<8x128xf32>
    %c0_33 = arith.constant 0 : index
    %c0_34 = arith.constant 0 : index
    %65 = vector.load %arg11[%c0_33, %c0_34] : memref<1x128xf32, #tpu.memory_space<vmem>>, vector<1x128xf32>
    %66 = vector.broadcast %65 : vector<1x128xf32> to vector<8x128xf32>
    %67 = arith.addf %64, %66 : vector<8x128xf32>
    %c0_35 = arith.constant 0 : index
    %c0_36 = arith.constant 0 : index
    %68 = vector.load %arg12[%c0_35, %c0_36] : memref<8x128xf32, #tpu.memory_space<vmem>>, vector<8x128xf32>
    tpu.vector_store %arg12[%c0_35, %c0_36], %67 {strides = array<i32>} : memref<8x128xf32, #tpu.memory_space<vmem>>, vector<8x128xf32>,
    return
  }
  func.func @transform_0(%arg0: i32) -> (i32, i32) {
    %c0_i32 = arith.constant 0 : i32
    %c0_i32_0 = arith.constant 0 : i32
    return %arg0, %c0_i32 : i32, i32
  }
  func.func @transform_1(%arg0: i32) -> (i32, i32) {
    %c0_i32 = arith.constant 0 : i32
    %c0_i32_0 = arith.constant 0 : i32
    %c0_i32_1 = arith.constant 0 : i32
    return %c0_i32, %c0_i32_0 : i32, i32
  }
  func.func @transform_2(%arg0: i32) -> (i32, i32) {
    %c0_i32 = arith.constant 0 : i32
    %c0_i32_0 = arith.constant 0 : i32
    %c0_i32_1 = arith.constant 0 : i32
    return %c0_i32, %c0_i32_0 : i32, i32
  }
  func.func @transform_3(%arg0: i32) -> (i32, i32) {
    %c0_i32 = arith.constant 0 : i32
    %c0_i32_0 = arith.constant 0 : i32
    %c0_i32_1 = arith.constant 0 : i32
    return %c0_i32, %c0_i32_0 : i32, i32
  }
  func.func @transform_4(%arg0: i32) -> (i32, i32) {
    %c0_i32 = arith.constant 0 : i32
    %c0_i32_0 = arith.constant 0 : i32
    %c0_i32_1 = arith.constant 0 : i32
    return %c0_i32, %c0_i32_0 : i32, i32
  }
  func.func @transform_5(%arg0: i32) -> (i32, i32) {
    %c0_i32 = arith.constant 0 : i32
    %c0_i32_0 = arith.constant 0 : i32
    %c0_i32_1 = arith.constant 0 : i32
    return %c0_i32, %c0_i32_0 : i32, i32
  }
  func.func @transform_6(%arg0: i32) -> (i32, i32) {
    %c0_i32 = arith.constant 0 : i32
    %c0_i32_0 = arith.constant 0 : i32
    %c0_i32_1 = arith.constant 0 : i32
    return %c0_i32, %c0_i32_0 : i32, i32
  }
  func.func @transform_7(%arg0: i32) -> (i32, i32) {
    %c0_i32 = arith.constant 0 : i32
    %c0_i32_0 = arith.constant 0 : i32
    %c0_i32_1 = arith.constant 0 : i32
    return %c0_i32, %c0_i32_0 : i32, i32
  }
  func.func @transform_8(%arg0: i32) -> (i32, i32) {
    %c0_i32 = arith.constant 0 : i32
    %c0_i32_0 = arith.constant 0 : i32
    %c0_i32_1 = arith.constant 0 : i32
    return %c0_i32, %c0_i32_0 : i32, i32
  }
  func.func @transform_9(%arg0: i32) -> (i32, i32) {
    %c0_i32 = arith.constant 0 : i32
    %c0_i32_0 = arith.constant 0 : i32
    %c0_i32_1 = arith.constant 0 : i32
    return %c0_i32, %c0_i32_0 : i32, i32
  }
  func.func @transform_10(%arg0: i32) -> (i32, i32) {
    %c0_i32 = arith.constant 0 : i32
    %c0_i32_0 = arith.constant 0 : i32
    %c0_i32_1 = arith.constant 0 : i32
    return %c0_i32, %c0_i32_0 : i32, i32
  }
  func.func @transform_11(%arg0: i32) -> (i32, i32) {
    %c0_i32 = arith.constant 0 : i32
    %c0_i32_0 = arith.constant 0 : i32
    return %arg0, %c0_i32 : i32, i32
  }
}

</mosaic_0001>

<bundles_post_ra>
// kernel: tpu_custom_call.1
= control target key start
LH: loop header
LB: loop body
LE: loop exit
PB: predicated region body
PF: predicated region fallthrough
CT: control target
= control target key end

     0   :  { %16 = vsyncpa [#allocation3], 0  ;;  %s937_s0 = inlined_call_operand.hbm [shape: f32[8,32], index: 0, kind: input, shape index: {}]   ;;  %s938_s1 = inlined_call_operand.hbm [shape: f32[32,128], index: 1, kind: input, shape index: {}]   ;;  %s939_s2 = inlined_call_operand.vmem [shape: f32[1,128], index: 2, kind: input, shape index: {}]   ;;  %s940_s3 = inlined_call_operand.vmem [shape: f32[1,128], index: 3, kind: input, shape index: {}]   ;;  %s941_s4 = inlined_call_operand.vmem [shape: f32[1,128], index: 4, kind: input, shape index: {}]   ;;  %s942_s5 = inlined_call_operand.hbm [shape: f32[128,128], index: 5, kind: input, shape index: {}]   ;;  %s943_s6 = inlined_call_operand.vmem [shape: f32[1,128], index: 6, kind: input, shape index: {}]   ;;  %s944_s7 = inlined_call_operand.vmem [shape: f32[1,128], index: 7, kind: input, shape index: {}]   ;;  %s945_s8 = inlined_call_operand.vmem [shape: f32[1,128], index: 8, kind: input, shape index: {}]   ;;  %s946_s9 = inlined_call_operand.hbm [shape: f32[128,128], index: 9, kind: input, shape index: {}]   ;;  %s947_s10 = inlined_call_operand.vmem [shape: f32[1,128], index: 10, kind: input, shape index: {}]   ;;  %s948_s11 = inlined_call_operand.hbm [shape: f32[8,128], index: 11, kind: output, shape index: {}]  }
   0x1   :  { %17 = vsyncpa [#allocation6], 0 }
   0x2   :  { %18 = vsyncpa [#allocation9], 0 }
   0x3   :  { %19 = vsyncpa [#allocation4], 0  ;;  %s756_s17 = smov [#allocation5]   ;;  %s638_s21 = scalar_lea.hbm %s938_s1, 512 }
   0x4   :  { %s35_s18 = sshll.u32 %s756_s17, 4  ;;  %p639_p0 = scmp.ne.s32.totalorder %s938_s1, %s638_s21  ;;  %s36_s18 = int_to_ptr.vmem [resolvable:$true] %s35_s18 }
   0x5   :  { %p642_p1 = scmp.lt.u32.totalorder %s638_s21, %s938_s1 }
   0x7   :  { %p644_p2 = pnand %p642_p1, %p639_p0 }
   0x9   :  { %647 = shalt.err (!%p644_p2)
}
   0xa   :  { %s648_s26 = scalar_lea.vmem %s36_s18, 512  ;;  %p653_p4 = scmp.lt.s32.totalorder %s36_s18, %s36_s18 }
   0xb   :  { %p649_p3 = scmp.ne.s32.totalorder %s36_s18, %s648_s26  ;;  %p654_p5 = scmp.lt.s32.totalorder %s648_s26, %s648_s26 }
   0xd   :  { %p655_p6 = por %p654_p5, %p653_p4 }
   0xf   :  { %p656_p7 = pnand %p655_p6, %p649_p3 }
  0x11   :  { %659 = shalt.err (!%p656_p7)
}
  0x12   :  { %s757_s27 = smov 128   ;;  %s758_s28 = smov 8  }
  0x13   :  { %41 = dma.hbm_to_vmem [thread:$0]  %s938_s1, 512, %s36_s18, [#allocation6], %s757_s27, %s757_s27, %s758_s28  }
  0x14   :  { %s759_s12 = smov [#allocation2]   ;;  %s760_s14 = smov [#allocation7]  }
  0x15   :  { %s26_s13 = sshll.u32 %s759_s12, 4  ;;  %s53_s15 = sshll.u32 %s760_s14, 4  ;;  %s27_s13 = int_to_ptr.vmem [resolvable:$true] %s26_s13  ;;  %s54_s15 = int_to_ptr.vmem [resolvable:$true] %s53_s15 }
  0x16   :  { %s660_s19 = scalar_lea.hbm %s937_s0, 128 }
  0x17   :  { %p661_p8 = scmp.ne.s32.totalorder %s937_s0, %s660_s19  ;;  %p664_p9 = scmp.lt.u32.totalorder %s660_s19, %s937_s0 }
  0x19   :  { %p666_p10 = pnand %p664_p9, %p661_p8 }
  0x1b   :  { %669 = shalt.err (!%p666_p10)
}
  0x1c   :  { %s670_s1 = scalar_lea.vmem %s27_s13, 128  ;;  %p675_p12 = scmp.lt.s32.totalorder %s27_s13, %s27_s13 }
  0x1d   :  { %p671_p11 = scmp.ne.s32.totalorder %s27_s13, %s670_s1  ;;  %p676_p13 = scmp.lt.s32.totalorder %s670_s1, %s670_s1 }
  0x1f   :  { %p677_p0 = por %p676_p13, %p675_p12 }
  0x21   :  { %p678_p1 = pnand %p677_p0, %p671_p11 }
  0x23   :  { %681 = shalt.err (!%p678_p1)
}
  0x24   :  { %29 = dma.hbm_to_vmem [thread:$0]  %s937_s0, 128, %s27_s13, [#allocation3]  }
  0x25   :  { %s682_s29 = scalar_lea.hbm %s942_s5, 2048 }
  0x26   :  { %p683_p2 = scmp.ne.s32.totalorder %s942_s5, %s682_s29  ;;  %p686_p3 = scmp.lt.u32.totalorder %s682_s29, %s942_s5 }
  0x28   :  { %p688_p4 = pnand %p686_p3, %p683_p2 }
  0x2a   :  { %691 = shalt.err (!%p688_p4)
}
  0x2b   :  { %s692_s17 = scalar_lea.vmem %s54_s15, 2048  ;;  %p697_p6 = scmp.lt.s32.totalorder %s54_s15, %s54_s15 }
  0x2c   :  { %p693_p5 = scmp.ne.s32.totalorder %s54_s15, %s692_s17  ;;  %p698_p7 = scmp.lt.s32.totalorder %s692_s17, %s692_s17 }
  0x2e   :  { %p699_p8 = por %p698_p7, %p697_p6 }
  0x30   :  { %p700_p9 = pnand %p699_p8, %p693_p5 }
  0x32   :  { %703 = shalt.err (!%p700_p9)
}
  0x33   :  { %59 = dma.hbm_to_vmem [thread:$0]  %s942_s5, 2048, %s54_s15, [#allocation6], %s757_s27, %s757_s27, %s758_s28  }
  0x34   :  { %s761_s19 = smov [#allocation8]   ;;  %s704_s23 = scalar_lea.hbm %s946_s9, 2048 }
  0x35   :  { %s71_s20 = sshll.u32 %s761_s19, 4  ;;  %p705_p10 = scmp.ne.s32.totalorder %s946_s9, %s704_s23  ;;  %s72_s20 = int_to_ptr.vmem [resolvable:$true] %s71_s20 }
  0x36   :  { %p708_p11 = scmp.lt.u32.totalorder %s704_s23, %s946_s9 }
  0x38   :  { %p710_p12 = pnand %p708_p11, %p705_p10 }
  0x3a   :  { %713 = shalt.err (!%p710_p12)
}
  0x3b   :  { %s714_s26 = scalar_lea.vmem %s72_s20, 2048  ;;  %p719_p0 = scmp.lt.s32.totalorder %s72_s20, %s72_s20 }
  0x3c   :  { %p715_p13 = scmp.ne.s32.totalorder %s72_s20, %s714_s26  ;;  %p720_p1 = scmp.lt.s32.totalorder %s714_s26, %s714_s26 }
  0x3e   :  { %p721_p2 = por %p720_p1, %p719_p0 }
  0x40   :  { %p722_p3 = pnand %p721_p2, %p715_p13 }
  0x42   :  { %725 = shalt.err (!%p722_p3)
}
  0x43   :  { %77 = dma.hbm_to_vmem [thread:$0]  %s946_s9, 2048, %s72_s20, [#allocation9], %s757_s27, %s757_s27, %s758_s28  }
  0x44   :  { %748 = dma.done.wait [#allocation3], 128  }
  0x45   :  { %749 = vsyncadd [#allocation3], 4294967168 }
  0x46   :  { %750 = dma.done.wait [#allocation6], 2560  }
  0x47   :  { %751 = vsyncadd [#allocation6], 4294964736 }
  0x48   :  { %752 = dma.done.wait [#allocation9], 2048  }
  0x49   :  { %753 = vsyncadd [#allocation9], 4294965248  ;;  %v762_v0 = vmov 0.0|0.0   ;;  %vm763_vm0 = vmmov 0   ;;  %v764_v1 = vmov 0.0   ;;  %v93_v2 = vld [vmem:[#allocation5] sm:$0xff] }
  0x4a   :  { %570 = vmatprep.subr.bf16.mxu0 %v762_v0  ;;  %497 = vmatprep.mubr.msk.f32.mxu0 %vm763_vm0, %v764_v1  ;;  %v94_v3 = vld [vmem:[#allocation5 + $0x8] sm:$0xff]  ;;  %v95_v4 = vld [vmem:[#allocation5 + $0x10] sm:$0xff]  ;;  %v96_v6 = vld [vmem:[#allocation5 + $0x18] sm:$0xff]  ;;  %vm104_vm1 = vcmask 261120   ;;  %s765_s13 = smov [#allocation10]  }
  0x4b   :  { %576 = vmatprep.subr.bf16.mxu1 %v762_v0  ;;  %532 = vmatprep.mubr.msk.f32.mxu1 %vm763_vm0, %v764_v1  ;;  %v571_v5 = vpack.c.bf16 %v94_v3, %v93_v2  ;;  %v574_v7 = vpack.c.bf16 %v96_v6, %v95_v4  ;;  %v92_v8 = vld [vmem:[#allocation2] sm:$0xff]  ;;  %v208_v9 = vld [vmem:[#allocation7] sm:$0xff]  ;;  %v209_v10 = vld [vmem:[#allocation7 + $0x8] sm:$0xff]  ;;  %s431_s19 = sshll.u32 %s765_s13, 4  ;;  %s432_s19 = int_to_ptr.vmem [resolvable:$true] %s431_s19 }
  0x4c   :  { %v577_v11 = vpack.c.bf16 %v209_v10, %v208_v9  ;;  %v442_v12 = vld [vmem:[%s939_s2] ss:$0 sm:$0xff]  ;;  %v210_v17 = vld [vmem:[#allocation7 + $0x10] sm:$0xff]  ;;  %v212_v20 = vld [vmem:[#allocation7 + $0x20] sm:$0xff]  ;;  %p731_p5 = scmp.lt.s32.totalorder %s432_s19, %s432_s19 }
  0x4d   :  { %572 = vmatpush3.bf16.msra.mxu0 %v571_v5  ;;  %v211_v18 = vld [vmem:[#allocation7 + $0x18] sm:$0xff]  ;;  %v213_v21 = vld [vmem:[#allocation7 + $0x28] sm:$0xff]  ;;  %v214_v23 = vld [vmem:[#allocation7 + $0x30] sm:$0xff] }
  0x4e   :  { %573 = vmatprep.subr.bf16.mxu0 %v762_v0  ;;  %578 = vmatpush3.bf16.msra.mxu1 %v577_v11  ;;  %v580_v19 = vpack.c.bf16 %v211_v18, %v210_v17  ;;  %v583_v22 = vpack.c.bf16 %v213_v21, %v212_v20  ;;  %v215_v24 = vld [vmem:[#allocation7 + $0x38] sm:$0xff]  ;;  %v216_v26 = vld [vmem:[#allocation7 + $0x40] sm:$0xff]  ;;  %v217_v27 = vld [vmem:[#allocation7 + $0x48] sm:$0xff] }
  0x4f   :  { %579 = vmatprep.subr.bf16.mxu1 %v762_v0  ;;  %v586_v25 = vpack.c.bf16 %v215_v24, %v214_v23  ;;  %v589_v28 = vpack.c.bf16 %v217_v27, %v216_v26  ;;  %v218_v29 = vld [vmem:[#allocation7 + $0x50] sm:$0xff]  ;;  %v219_v30 = vld [vmem:[#allocation7 + $0x58] sm:$0xff]  ;;  %v220_v32 = vld [vmem:[#allocation7 + $0x60] sm:$0xff] }
  0x50   :  { %v592_v31 = vpack.c.bf16 %v219_v30, %v218_v29  ;;  %v221_v33 = vld [vmem:[#allocation7 + $0x68] sm:$0xff]  ;;  %v222_v35 = vld [vmem:[#allocation7 + $0x70] sm:$0xff]  ;;  %v223_v36 = vld [vmem:[#allocation7 + $0x78] sm:$0xff] }
  0x51   :  { %575 = vmatpush3.bf16.msra.mxu0 %v574_v7  ;;  %v595_v34 = vpack.c.bf16 %v221_v33, %v220_v32  ;;  %v598_v37 = vpack.c.bf16 %v223_v36, %v222_v35  ;;  %v444_v47 = vld [vmem:[%s940_s3] ss:$0 sm:$0xff]  ;;  %v331_v53 = vld [vmem:[#allocation8] sm:$0xff]  ;;  %v332_v54 = vld [vmem:[#allocation8 + $0x8] sm:$0xff] }
  0x52   :  { %600 = vmatprep.subr.bf16.mxu0 %v762_v0  ;;  %581 = vmatpush3.bf16.msra.mxu1 %v580_v19  ;;  %v445_v49 = vld [vmem:[%s941_s4] ss:$0 sm:$0xff]  ;;  %v601_v55 = vpack.c.bf16 %v332_v54, %v331_v53  ;;  %v333_v61 = vld [vmem:[#allocation8 + $0x10] sm:$0xff]  ;;  %v336_v2 = vld [vmem:[#allocation8 + $0x28] sm:$0xff] }
  0x53   :  { %582 = vmatprep.subr.bf16.mxu1 %v762_v0  ;;  %v446_v56 = vld [vmem:[%s943_s6] ss:$0 sm:$0xff]  ;;  %v337_v4 = vld [vmem:[#allocation8 + $0x30] sm:$0xff]  ;;  %v339_v7 = vld [vmem:[#allocation8 + $0x40] sm:$0xff] }
  0x54   :  { %498 = vmatmul.mubr.msk.f32.vlgmr.msra.gmra.mrb[0].mxu0 %vm104_vm1, %v92_v8  ;;  %v334_v62 = vld [vmem:[#allocation8 + $0x18] sm:$0xff]  ;;  %v340_v8 = vld [vmem:[#allocation8 + $0x48] sm:$0xff]  ;;  %v341_v10 = vld [vmem:[#allocation8 + $0x50] sm:$0xff] }
  0x55   :  { %567 = vmatprep.mubr.msk.f32.mxu0 %vm763_vm0, %v764_v1  ;;  %602 = vmatpush3.bf16.msra.mxu0 %v601_v55  ;;  %v604_v63 = vpack.c.bf16 %v334_v62, %v333_v61  ;;  %v335_v1 = vld [vmem:[#allocation8 + $0x20] sm:$0xff]  ;;  %v338_v5 = vld [vmem:[#allocation8 + $0x38] sm:$0xff]  ;;  %v613_v9 = vpack.c.bf16 %v340_v8, %v339_v7 }
  0x56   :  { %584 = vmatpush3.bf16.msra.mxu1 %v583_v22  ;;  %603 = vmatprep.subr.bf16.mxu0 %v762_v0  ;;  %v607_v3 = vpack.c.bf16 %v336_v2, %v335_v1  ;;  %v610_v6 = vpack.c.bf16 %v338_v5, %v337_v4  ;;  %v342_v11 = vld [vmem:[#allocation8 + $0x58] sm:$0xff] }
  0x57   :  { %585 = vmatprep.subr.bf16.mxu1 %v762_v0  ;;  %v346_v17 = vld [vmem:[#allocation8 + $0x78] sm:$0xff] }
  0x58   :  { %v449_v33 = vld [vmem:[%s947_s10] ss:$0 sm:$0xff] }
  0x59   :  { %605 = vmatpush3.bf16.msra.mxu0 %v604_v63 }
  0x5a   :  { %587 = vmatpush3.bf16.msra.mxu1 %v586_v25  ;;  %606 = vmatprep.subr.bf16.mxu0 %v762_v0 }
  0x5b   :  { %588 = vmatprep.subr.bf16.mxu1 %v762_v0 }
  0x5d   :  { %608 = vmatpush3.bf16.msra.mxu0 %v607_v3 }
  0x5e   :  { %590 = vmatpush3.bf16.msra.mxu1 %v589_v28  ;;  %609 = vmatprep.subr.bf16.mxu0 %v762_v0  ;;  %v447_v28 = vld [vmem:[%s944_s7] ss:$0 sm:$0xff]  ;;  %s726_s7 = scalar_lea.vmem %s432_s19, 128 }
  0x5f   :  { %591 = vmatprep.subr.bf16.mxu1 %v762_v0  ;;  %p727_p4 = scmp.ne.s32.totalorder %s432_s19, %s726_s7  ;;  %p732_p6 = scmp.lt.s32.totalorder %s726_s7, %s726_s7 }
  0x61   :  { %611 = vmatpush3.bf16.msra.mxu0 %v610_v6  ;;  %p733_p7 = por %p732_p6, %p731_p5 }
  0x62   :  { %593 = vmatpush3.bf16.msra.mxu1 %v592_v31  ;;  %612 = vmatprep.subr.bf16.mxu0 %v762_v0 }
  0x63   :  { %594 = vmatprep.subr.bf16.mxu1 %v762_v0  ;;  %p734_p8 = pnand %p733_p7, %p727_p4 }
  0x65   :  { %614 = vmatpush3.bf16.msra.mxu0 %v613_v9 }
  0x66   :  { %596 = vmatpush3.bf16.msra.mxu1 %v595_v34  ;;  %615 = vmatprep.subr.bf16.mxu0 %v762_v0 }
  0x67   :  { %597 = vmatprep.subr.bf16.mxu1 %v762_v0 }
  0x6a   :  { %599 = vmatpush3.bf16.msra.mxu1 %v598_v37 }
 0x127   :  { %v174_v13 = vpop.f32.mrb[0].mxu0 }
 0x128   :  { %v175_v14 = vadd.f32 %v442_v12, %v174_v13  ;;  %v499_v15 = vpop.f32.mrb[1].mxu0  ;;  %v616_v12 = vpack.c.bf16 %v342_v11, %v341_v10  ;;  %v343_v13 = vld [vmem:[#allocation8 + $0x60] sm:$0xff] }
 0x12a   :  { %178 = vadd.xlane.f32.xlu0 %v175_v14  ;;  %v181_v16 = vmul.f32 %v175_v14, %v175_v14  ;;  %617 = vmatpush3.bf16.msra.mxu0 %v616_v12 }
 0x12b   :  { %618 = vmatprep.subr.bf16.mxu0 %v762_v0 }
 0x12e   :  { %182 = vadd.xlane.f32.xlu0 %v181_v16  ;;  %v345_v16 = vld [vmem:[#allocation8 + $0x70] sm:$0xff] }
 0x12f   :  { %v622_v18 = vpack.c.bf16 %v346_v17, %v345_v16 }
 0x1b7   :  { %v179_v38 = vpop.xlane.xlu0 %178 }
 0x1b8   :  { %v180_v39 = vmul.f32 0.015625, %v179_v38 }
 0x1ba   :  { %v185_v41 = vmul.f32 %v180_v39, %v180_v39  ;;  %v187_v45 = vsub.f32 %v175_v14, %v180_v39  ;;  %v344_v14 = vld [vmem:[#allocation8 + $0x68] sm:$0xff] }
 0x1bb   :  { %v183_v40 = vpop.xlane.xlu0 %182  ;;  %v619_v15 = vpack.c.bf16 %v344_v14, %v343_v13 }
 0x1bc   :  { %v184_v42 = vmul.f32 0.015625, %v183_v40 }
 0x1bd   :  { %620 = vmatpush3.bf16.msra.mxu0 %v619_v15 }
 0x1be   :  { %v186_v43 = vsub.f32 %v184_v42, %v185_v41  ;;  %621 = vmatprep.subr.bf16.mxu0 %v762_v0  ;;  %v448_v0 = vld [vmem:[%s945_s8] ss:$0 sm:$0xff] }
 0x1c0   :  { %v188_v44 = vadd.f32 1e-05, %v186_v43 }
 0x1c1   :  { %623 = vmatpush3.bf16.msra.mxu0 %v622_v18 }
 0x1c2   :  { %634 = vrsqrt.f32 %v188_v44 }
 0x1cc   :  { %v635_v46 = vpop.eup %634 }
 0x1cd   :  { %v190_v48 = vmul.f32 %v635_v46, %v187_v45 }
 0x1cf   :  { %v198_v50 = vmul.f32 %v444_v47, %v190_v48 }
 0x1d1   :  { %v206_v51 = vadd.f32 %v445_v49, %v198_v50 }
 0x1d3   :  { %v207_v52 = vmax.f32 %v206_v51, 0.0 }
 0x1d5   :  { %533 = vmatmul.mubr.f32.vlgmr.msra.gmra.mrb[0].mxu1 %v207_v52 }
 0x2a8   :  { %v297_v57 = vpop.f32.mrb[0].mxu1 }
 0x2a9   :  { %v298_v58 = vadd.f32 %v446_v56, %v297_v57  ;;  %v534_v59 = vpop.f32.mrb[1].mxu1 }
 0x2ab   :  { %301 = vadd.xlane.f32.xlu1 %v298_v58  ;;  %v304_v60 = vmul.f32 %v298_v58, %v298_v58 }
 0x2af   :  { %305 = vadd.xlane.f32.xlu1 %v304_v60 }
 0x338   :  { %v302_v19 = vpop.xlane.xlu1 %301 }
 0x339   :  { %v303_v20 = vmul.f32 0.015625, %v302_v19 }
 0x33b   :  { %v308_v22 = vmul.f32 %v303_v20, %v303_v20  ;;  %v310_v26 = vsub.f32 %v298_v58, %v303_v20 }
 0x33c   :  { %v306_v21 = vpop.xlane.xlu1 %305 }
 0x33d   :  { %v307_v23 = vmul.f32 0.015625, %v306_v21 }
 0x33f   :  { %v309_v24 = vsub.f32 %v307_v23, %v308_v22 }
 0x341   :  { %v311_v25 = vadd.f32 1e-05, %v309_v24 }
 0x343   :  { %636 = vrsqrt.f32 %v311_v25 }
 0x34d   :  { %v637_v27 = vpop.eup %636 }
 0x34e   :  { %v313_v29 = vmul.f32 %v637_v27, %v310_v26 }
 0x350   :  { %v321_v30 = vmul.f32 %v447_v28, %v313_v29 }
 0x352   :  { %v329_v31 = vadd.f32 %v448_v0, %v321_v30 }
 0x354   :  { %v330_v32 = vmax.f32 %v329_v31, 0.0 }
 0x356   :  { %568 = vmatmul.mubr.f32.vlgmr.msra.gmra.mrb[2].mxu0 %v330_v32 }
 0x429   :  { %v420_v34 = vpop.f32.mrb[2].mxu0 }
 0x42a   :  { %v421_v35 = vadd.f32 %v449_v33, %v420_v34  ;;  %v569_v36 = vpop.f32.mrb[3].mxu0 }
 0x42c   :  { %424 = vst [vmem:[#allocation10] sm:$0xff] %v421_v35 }
 0x42d   :  { %737 = shalt.err (!%p734_p8)
}
 0x42e   :  { %s738_s21 = scalar_lea.hbm %s948_s11, 128 }
 0x42f   :  { %p739_p9 = scmp.ne.s32.totalorder %s948_s11, %s738_s21  ;;  %p742_p10 = scmp.lt.u32.totalorder %s738_s21, %s948_s11 }
 0x431   :  { %p744_p11 = pnand %p742_p10, %p739_p9 }
 0x433   :  { %747 = shalt.err (!%p744_p11)
}
 0x434   :  { %434 = dma.vmem_to_hbm [thread:$0]  %s432_s19, 128, %s948_s11, [#allocation4]  }
 0x435   :  { %754 = dma.done.wait [#allocation4], 128  }
 0x436   :  { %755 = vsyncadd [#allocation4], 4294967168 }
 0x437   :  { %438 = vsyncpa [#allocation3], 1 }
 0x438   :  { %439 = vsyncpa [#allocation6], 1 }
 0x439   :  { %440 = vsyncpa [#allocation9], 1 }
 0x43a   :  { %441 = vsyncpa [#allocation4], 1 }

</bundles_post_ra>
